<compile_context>
chip_gen: v7x
topology: tpu7x:2x2x1
jax: 0.10.0
libtpu: 0.0.40
codegen_flags: <defaults>
</compile_context>

<pallas_src>
import functools

import jax
import jax.numpy as jnp
from jax import lax
from jax.experimental import pallas as pl
from jax.experimental.pallas import tpu as pltpu


def _round_up(x, m):
    return ((x + m - 1) // m) * m


def _round_down(x, m):
    return (x // m) * m


# Explicit mapping instead of torch's eval(non_linearity).
_ACTIVATIONS = {
    "torch.relu": lambda h: jnp.maximum(h, 0.0),
    "torch.tanh": jnp.tanh,
    "torch.sigmoid": jax.nn.sigmoid,
    "F.gelu": jax.nn.gelu,
    "torch.nn.functional.gelu": jax.nn.gelu,
}


def nn_probe_kernel(x_ref, w1_ref, b1_ref, w2_ref, b2_ref, out_ref, *, act_fn):
    """One batch tile of: logits = act(x @ W1 + b1) @ w2 + b2.

    x_ref  : (TB, Din)  VMEM, pipelined over the batch grid axis
    w1_ref : (Din, H)   VMEM, resident (constant index_map)
    b1_ref : (1, H)     VMEM, resident (f32)
    w2_ref : (1, H)     VMEM, resident (fc2 weight as a row, f32)
    b2_ref : (1,)       SMEM scalar (fc2 bias)
    out_ref: (1, TB)    VMEM, lane-dense logits row for this tile
    """
    # fc1 on the MXU, f32 accumulation.
    h = jnp.dot(x_ref[...], w1_ref[...], preferred_element_type=jnp.float32)
    h = h + b1_ref[...].astype(jnp.float32)
    h = act_fn(h)

    # fc2: contract the hidden dim of both operands -> (1, TB) lane-dense row.
    logits = lax.dot_general(
        w2_ref[...].astype(jnp.float32), h,
        dimension_numbers=(((1,), (1,)), ((), ())),
        preferred_element_type=jnp.float32)          # (1, TB)

    out_ref[...] = (logits + b2_ref[0]).astype(out_ref.dtype)


def _vmem_capacity_bytes():
    """Generation-aware physical VMEM; conservative (v7x-sized) fallback."""
    try:
        return int(pltpu.get_tpu_info().vmem_capacity_bytes)
    except Exception:
        return 64 << 20


def _choose_batch_tile(B, Din, H, x_itemsize, w1_itemsize, block_b=None):
    """Byte-sized batch tile. Returns (TB, grid, vmem_capacity_bytes)."""
    vmem_cap = _vmem_capacity_bytes()
    vmem_budget = min((vmem_cap * 3) // 4, 48 << 20)

    # DMA-optimal x buffer: ~4 MiB is enough to saturate HBM on all three gens.
    x_buf_target = 4 << 20
    tb_dma = max(x_buf_target // max(Din * x_itemsize, 1), 128)

    # VMEM-feasible TB: per-row cost = x dbl-buf + f32 h temp + out dbl-buf;
    # fixed cost = W1 dbl-buf + b1/w2 rows + slack.
    fixed = 2 * Din * H * w1_itemsize + 4 * H * 4 + (256 << 10)
    per_row = 2 * Din * x_itemsize + H * 4 + 2 * 4
    tb_vmem = max((vmem_budget - fixed) // per_row, 128)

    TB = min(tb_dma, tb_vmem)
    if block_b is not None:
        TB = min(TB, max(int(block_b), 128))
    TB = max(_round_down(TB, 128), 128)

    # Keep >= 2 grid steps when possible so v7x's 2 TensorCores both get work.
    if B >= 256:
        TB = max(min(TB, _round_up(pl.cdiv(B, 2), 128)), 128)

    if B <= TB:
        # Single full-array tile: blocks equal the full dims, no alignment pad.
        return B, 1, vmem_cap

    grid = pl.cdiv(B, TB)
    if grid > 1 and grid % 2 == 1:
        # Nudge towards an even grid (v7x core balance) if 128-alignment allows.
        tb_alt = max(_round_up(pl.cdiv(B, grid + 1), 128), 128)
        if pl.cdiv(B, tb_alt) % 2 == 0:
            TB, grid = tb_alt, pl.cdiv(B, tb_alt)
    return TB, grid, vmem_cap


def nn_probe_forward(x, w1, b1, w2, b2, *, non_linearity="torch.relu",
                     block_b=None, compute_dtype=None, interpret=False):
    """x (B, Din), w1 (Din, H), b1 (H,), w2 (H,), b2 scalar -> logits (B,)."""
    B, Din = x.shape
    Din_w, H = w1.shape
    assert Din == Din_w, (Din, Din_w)
    act_fn = _ACTIVATIONS[non_linearity]

    if compute_dtype is not None:
        # Optional bf16 streaming of the dominant x / W1 reads (f32 accumulation
        # is preserved by preferred_element_type inside the kernel).
        x = x.astype(compute_dtype)
        w1 = w1.astype(compute_dtype)
    # Note: no silent w1 -> x.dtype downcast; mixed dtypes promote in the dot.

    x_itemsize = jnp.dtype(x.dtype).itemsize
    w1_itemsize = jnp.dtype(w1.dtype).itemsize

    TB, grid, vmem_cap = _choose_batch_tile(
        B, Din, H, x_itemsize, w1_itemsize, block_b)

    b1_row = b1.reshape(1, H).astype(jnp.float32)
    w2_row = w2.reshape(1, H).astype(jnp.float32)
    b2_s = jnp.asarray(b2, dtype=jnp.float32).reshape(1)

    # Explicit scoped-VMEM limit so the byte-sized tile is actually allowed.
    est_vmem = (2 * TB * Din * x_itemsize        # x double-buffer
                + 2 * Din * H * w1_itemsize      # W1 (double-buffered by default)
                + 4 * H * 4                      # b1 / w2 rows (f32)
                + 2 * TB * 4                     # out row double-buffer (f32)
                + TB * H * 4)                    # f32 h intermediate
    vmem_limit = int(min(max(2 * est_vmem, 32 << 20), (vmem_cap * 3) // 4))

    cost = pl.CostEstimate(
        flops=2 * B * Din * H + 2 * B * H,
        transcendentals=0,
        bytes_accessed=(B * Din * x_itemsize + Din * H * w1_itemsize
                        + (2 * H + 1) * 4 + B * 4),
    )

    out = pl.pallas_call(
        functools.partial(nn_probe_kernel, act_fn=act_fn),
        out_shape=jax.ShapeDtypeStruct((1, B), jnp.float32),
        grid_spec=pltpu.PrefetchScalarGridSpec(
            num_scalar_prefetch=0,
            grid=(grid,),
            in_specs=[
                pl.BlockSpec((TB, Din), lambda i: (i, 0)),           # x tile
                pl.BlockSpec((Din, H), lambda i: (0, 0)),            # W1 (resident)
                pl.BlockSpec((1, H), lambda i: (0, 0)),              # b1 (resident)
                pl.BlockSpec((1, H), lambda i: (0, 0)),              # w2 row (resident)
                pl.BlockSpec(memory_space=pltpu.MemorySpace.SMEM),   # b2 scalar
            ],
            out_specs=pl.BlockSpec((1, TB), lambda i: (0, i)),       # lane-dense row
        ),
        compiler_params=pltpu.CompilerParams(
            # "parallel" batch axis: shards grid steps across both TCs on v7x.
            dimension_semantics=("parallel",),
            vmem_limit_bytes=vmem_limit),
        cost_estimate=cost,
        interpret=interpret,
    )(x, w1, b1_row, w2_row, b2_s)

    return out[0, :]


if __name__ == "__main__":
    # Shapes consistent with the module: NNProbe(non_linearity="torch.relu",
    # input_dim=32) -> hidden_dim = 2 * input_dim = 64; batch = 8.
    batch, input_dim = 8, 32
    hidden_dim = 2 * input_dim
    bias_init = 0.0

    key = jax.random.PRNGKey(0)
    k_x, k_w1, k_b1, k_w2, k_b2, k_big = jax.random.split(key, 6)

    # nn.Linear default init: U(-1/sqrt(fan_in), 1/sqrt(fan_in)).
    lim1 = 1.0 / float(input_dim) ** 0.5
    w1 = jax.random.uniform(k_w1, (input_dim, hidden_dim), jnp.float32, -lim1, lim1)
    b1 = jax.random.uniform(k_b1, (hidden_dim,), jnp.float32, -lim1, lim1)
    lim2 = 1.0 / float(hidden_dim) ** 0.5
    w2 = jax.random.uniform(k_w2, (hidden_dim,), jnp.float32, -lim2, lim2)
    if bias_init != 0.0:
        b2 = jnp.float32(bias_init)               # fc2.bias.data.fill_(bias_init)
    else:
        b2 = jax.random.uniform(k_b2, (), jnp.float32, -lim2, lim2)

    def reference(xv):
        # Pure-JAX reference (matches NNProbe.forward, non_linearity="torch.relu").
        h_ref = jnp.maximum(xv @ w1 + b1, 0.0)
        return h_ref @ w2 + b2

    # 1) Module-default small shape: single full-array tile (grid=1).
    x = jax.random.normal(k_x, (batch, input_dim), dtype=jnp.float32)
    logits = jax.block_until_ready(nn_probe_forward(x, w1, b1, w2, b2))
    assert logits.shape == (batch,)
    assert jnp.allclose(logits, reference(x), atol=1e-4, rtol=1e-4), (
        float(jnp.max(jnp.abs(logits - reference(x)))))

    # 2) Multi-tile pipelined path (forced 128-row tiles), including a ragged
    #    final block (B=300) that exercises the no-host-pad partial-block path.
    for big_b in (256, 300):
        xb = jax.random.normal(k_big, (big_b, input_dim), dtype=jnp.float32)
        lb = jax.block_until_ready(
            nn_probe_forward(xb, w1, b1, w2, b2, block_b=128))
        assert lb.shape == (big_b,)
        assert jnp.allclose(lb, reference(xb), atol=1e-4, rtol=1e-4), (
            big_b, float(jnp.max(jnp.abs(lb - reference(xb)))))

    print("KERNEL_OK")
</pallas_src>

<mosaic_0001>
module attributes {stable_mosaic.version = 11 : i64} {
  func.func @nn_probe_kernel(%arg0: i32, %arg1: memref<8x32xf32, #tpu.memory_space<vmem>>, %arg2: memref<32x64xf32, #tpu.memory_space<vmem>>, %arg3: memref<1x64xf32, #tpu.memory_space<vmem>>, %arg4: memref<1x64xf32, #tpu.memory_space<vmem>>, %arg5: memref<1xf32, #tpu.memory_space<smem>>, %arg6: memref<1x8xf32, #tpu.memory_space<vmem>>) attributes {dimension_semantics = [#tpu.dimension_semantics<parallel>], iteration_bounds = array<i64: 1>, scalar_prefetch = 0 : i64, scratch_operands = 0 : i64, tpu.core_type = #tpu.core_type<tc>, window_params = [{transform_indices = @transform_0, window_bounds = array<i64: 8, 32>}, {pipeline_mode = #tpu.pipeline_mode<synchronous>, transform_indices = @transform_1, window_bounds = array<i64: 32, 64>}, {pipeline_mode = #tpu.pipeline_mode<synchronous>, transform_indices = @transform_2, window_bounds = array<i64: 1, 64>}, {pipeline_mode = #tpu.pipeline_mode<synchronous>, transform_indices = @transform_3, window_bounds = array<i64: 1, 64>}, {transform_indices = @transform_4, window_bounds = array<i64: 1>}, {transform_indices = @transform_5, window_bounds = array<i64: 1, 8>}]} {
    %c0 = arith.constant 0 : index
    %c0_0 = arith.constant 0 : index
    %0 = vector.load %arg1[%c0, %c0_0] : memref<8x32xf32, #tpu.memory_space<vmem>>, vector<8x32xf32>
    %c0_1 = arith.constant 0 : index
    %c0_2 = arith.constant 0 : index
    %1 = vector.load %arg2[%c0_1, %c0_2] : memref<32x64xf32, #tpu.memory_space<vmem>>, vector<32x64xf32>
    %cst = arith.constant dense<0.000000e+00> : vector<8x64xf32>
    %2 = tpu.matmul %0, %1, %cst {dimension_numbers = #tpu.dot_dimension_numbers<[1], [0], [0], [1], [0, 0, 1, 1], [], []>} : vector<8x32xf32>, vector<32x64xf32>, vector<8x64xf32> -> vector<8x64xf32>
    %c0_3 = arith.constant 0 : index
    %c0_4 = arith.constant 0 : index
    %3 = vector.load %arg3[%c0_3, %c0_4] : memref<1x64xf32, #tpu.memory_space<vmem>>, vector<1x64xf32>
    %4 = vector.broadcast %3 : vector<1x64xf32> to vector<8x64xf32>
    %5 = arith.addf %2, %4 : vector<8x64xf32>
    %cst_5 = arith.constant 0.000000e+00 : f32
    %6 = vector.broadcast %cst_5 : f32 to vector<8x64xf32>
    %7 = arith.maximumf %5, %6 : vector<8x64xf32>
    %c0_6 = arith.constant 0 : index
    %c0_7 = arith.constant 0 : index
    %8 = vector.load %arg4[%c0_6, %c0_7] : memref<1x64xf32, #tpu.memory_space<vmem>>, vector<1x64xf32>
    %cst_8 = arith.constant dense<0.000000e+00> : vector<1x8xf32>
    %9 = tpu.matmul %8, %7, %cst_8 {dimension_numbers = #tpu.dot_dimension_numbers<[1], [1], [0], [0], [0, 0, 1, 0], [], []>} : vector<1x64xf32>, vector<8x64xf32>, vector<1x8xf32> -> vector<1x8xf32>
    %c0_9 = arith.constant 0 : index
    %10 = memref.load %arg5[%c0_9] : memref<1xf32, #tpu.memory_space<smem>>
    %11 = vector.broadcast %10 : f32 to vector<1x8xf32>
    %12 = arith.addf %9, %11 : vector<1x8xf32>
    %c0_10 = arith.constant 0 : index
    %c0_11 = arith.constant 0 : index
    %13 = vector.load %arg6[%c0_10, %c0_11] : memref<1x8xf32, #tpu.memory_space<vmem>>, vector<1x8xf32>
    tpu.vector_store %arg6[%c0_10, %c0_11], %12 {strides = array<i32>} : memref<1x8xf32, #tpu.memory_space<vmem>>, vector<1x8xf32>,
    return
  }
  func.func @transform_0(%arg0: i32) -> (i32, i32) {
    %c0_i32 = arith.constant 0 : i32
    %c0_i32_0 = arith.constant 0 : i32
    return %arg0, %c0_i32 : i32, i32
  }
  func.func @transform_1(%arg0: i32) -> (i32, i32) {
    %c0_i32 = arith.constant 0 : i32
    %c0_i32_0 = arith.constant 0 : i32
    %c0_i32_1 = arith.constant 0 : i32
    return %c0_i32, %c0_i32_0 : i32, i32
  }
  func.func @transform_2(%arg0: i32) -> (i32, i32) {
    %c0_i32 = arith.constant 0 : i32
    %c0_i32_0 = arith.constant 0 : i32
    %c0_i32_1 = arith.constant 0 : i32
    return %c0_i32, %c0_i32_0 : i32, i32
  }
  func.func @transform_3(%arg0: i32) -> (i32, i32) {
    %c0_i32 = arith.constant 0 : i32
    %c0_i32_0 = arith.constant 0 : i32
    %c0_i32_1 = arith.constant 0 : i32
    return %c0_i32, %c0_i32_0 : i32, i32
  }
  func.func @transform_4(%arg0: i32) -> i32 {
    %c0_i32 = arith.constant 0 : i32
    %c0_i32_0 = arith.constant 0 : i32
    return %c0_i32 : i32
  }
  func.func @transform_5(%arg0: i32) -> (i32, i32) {
    %c0_i32 = arith.constant 0 : i32
    %c0_i32_0 = arith.constant 0 : i32
    return %c0_i32, %arg0 : i32, i32
  }
}

</mosaic_0001>

<bundles_post_ra>
// kernel: tpu_custom_call.1
= control target key start
LH: loop header
LB: loop body
LE: loop exit
PB: predicated region body
PF: predicated region fallthrough
CT: control target
= control target key end

     0   :  { %11 = vsyncpa [#allocation4], 0  ;;  %s436_s0 = inlined_call_operand.hbm [shape: f32[8,32], index: 0, kind: input, shape index: {}]   ;;  %s437_s1 = inlined_call_operand.hbm [shape: f32[32,64], index: 1, kind: input, shape index: {}]   ;;  %s438_s2 = inlined_call_operand.vmem [shape: f32[1,64], index: 2, kind: input, shape index: {}]   ;;  %s439_s3 = inlined_call_operand.vmem [shape: f32[1,64], index: 3, kind: input, shape index: {}]   ;;  %s440_s4 = inlined_call_operand.<no memory space> [shape: f32[1], index: 4, kind: input, shape index: {}]   ;;  %s441_s5 = inlined_call_operand.hbm [shape: f32[1,8], index: 5, kind: output, shape index: {}]  }
   0x1   :  { %12 = vsyncpa [#allocation7], 0 }
   0x2   :  { %13 = vsyncpa [#allocation5], 0  ;;  %s346_s18 = smov [#allocation3]   ;;  %s347_s20 = smov [#allocation6]  }
   0x3   :  { %s20_s19 = sshll.u32 %s346_s18, 4  ;;  %s29_s21 = sshll.u32 %s347_s20, 4  ;;  %s21_s19 = int_to_ptr.vmem [resolvable:$true] %s20_s19  ;;  %s384_s21 = int_to_ptr.vmem [resolvable:$true] %s29_s21 }
   0x4   :  { %s274_s24 = scalar_lea.hbm %s436_s0, 128 }
   0x5   :  { %p275_p0 = scmp.ne.s32.totalorder %s436_s0, %s274_s24  ;;  %p278_p1 = scmp.lt.u32.totalorder %s274_s24, %s436_s0 }
   0x7   :  { %p280_p2 = pnand %p278_p1, %p275_p0 }
   0x9   :  { %283 = shalt.err (!%p280_p2)
}
   0xa   :  { %s284_s29 = scalar_lea.vmem %s21_s19, 128  ;;  %p289_p4 = scmp.lt.s32.totalorder %s21_s19, %s21_s19 }
   0xb   :  { %p285_p3 = scmp.ne.s32.totalorder %s21_s19, %s284_s29  ;;  %p290_p5 = scmp.lt.s32.totalorder %s284_s29, %s284_s29 }
   0xd   :  { %p291_p6 = por %p290_p5, %p289_p4 }
   0xf   :  { %p292_p7 = pnand %p291_p6, %p285_p3 }
  0x11   :  { %295 = shalt.err (!%p292_p7)
}
  0x12   :  { %23 = dma.hbm_to_vmem [thread:$0]  %s436_s0, 128, %s21_s19, [#allocation4]  }
  0x13   :  { %s296_s9 = scalar_lea.hbm %s437_s1, 512 }
  0x14   :  { %p297_p8 = scmp.ne.s32.totalorder %s437_s1, %s296_s9  ;;  %p300_p9 = scmp.lt.u32.totalorder %s296_s9, %s437_s1 }
  0x16   :  { %p302_p10 = pnand %p300_p9, %p297_p8 }
  0x18   :  { %305 = shalt.err (!%p302_p10)
}
  0x19   :  { %s306_s14 = scalar_lea.vmem %s384_s21, 512  ;;  %p311_p12 = scmp.lt.s32.totalorder %s384_s21, %s384_s21 }
  0x1a   :  { %p307_p11 = scmp.ne.s32.totalorder %s384_s21, %s306_s14  ;;  %p312_p13 = scmp.lt.s32.totalorder %s306_s14, %s306_s14 }
  0x1c   :  { %p313_p0 = por %p312_p13, %p311_p12 }
  0x1e   :  { %p314_p1 = pnand %p313_p0, %p307_p11 }
  0x20   :  { %317 = shalt.err (!%p314_p1)
}
  0x21   :  { %s348_s0 = smov 128   ;;  %s349_s15 = smov 8  }
  0x22   :  { %35 = dma.hbm_to_vmem [thread:$0]  %s437_s1, 512, %s384_s21, [#allocation7], %s348_s0, %s348_s0, %s349_s15  }
  0x23   :  { %340 = dma.done.wait [#allocation4], 128  }
  0x24   :  { %341 = vsyncadd [#allocation4], 4294967168 }
  0x25   :  { %342 = dma.done.wait [#allocation7], 512  }
  0x26   :  { %343 = vsyncadd [#allocation7], 4294966784  ;;  %v350_v0 = vmov 0.0|0.0   ;;  %vm351_vm0 = vmmov 0   ;;  %v352_v1 = vmov 0.0   ;;  %v49_v2 = vld [vmem:[#allocation6] sm:$0xff]  ;;  %v137_v15 = vstv %s440_s4 }
  0x27   :  { %260 = vmatprep.subr.bf16.mxu0 %v350_v0  ;;  %252 = vmatprep.mubr.msk.f32.mxu0 %vm351_vm0, %v352_v1  ;;  %v50_v3 = vld [vmem:[#allocation6 + $0x8] sm:$0xff]  ;;  %v51_v4 = vld [vmem:[#allocation6 + $0x10] sm:$0xff]  ;;  %v52_v6 = vld [vmem:[#allocation6 + $0x18] sm:$0xff]  ;;  %vm60_vm1 = vcmask 261120   ;;  %vm138_vm2 = vcmask 523264   ;;  %s353_s23 = smov [#allocation8]  }
  0x28   :  { %255 = vmatprep.subr.mxu1 %v352_v1  ;;  %257 = vmatprep.mubr.msk.f32.mxu1 %vm351_vm0, %v352_v1  ;;  %v261_v5 = vpack.c.bf16 %v50_v3, %v49_v2  ;;  %v264_v7 = vpack.c.bf16 %v52_v6, %v51_v4  ;;  %v48_v8 = vld [vmem:[#allocation3] sm:$0xff]  ;;  %s223_s24 = sshll.u32 %s353_s23, 4  ;;  %vm215_vm3 = vcmask 57344   ;;  %s224_s24 = int_to_ptr.vmem [resolvable:$true] %s223_s24 }
  0x29   :  { %v233_v9 = vld [vmem:[%s438_s2] ss:$0 sm:$0xff]  ;;  %s318_s2 = scalar_lea.vmem %s224_s24, 16  ;;  %s322_s25 = scalar_lea.vmem %s224_s24, 32 }
  0x2a   :  { %262 = vmatpush3.bf16.msra.mxu0 %v261_v5  ;;  %v135_v14 = vld [vmem:[%s439_s3] sm:$0x1]  ;;  %p319_p2 = scmp.ne.s32.totalorder %s224_s24, %s318_s2  ;;  %p323_p3 = scmp.lt.s32.totalorder %s224_s24, %s224_s24 }
  0x2b   :  { %263 = vmatprep.subr.bf16.mxu0 %v350_v0  ;;  %p324_p4 = scmp.lt.s32.totalorder %s322_s25, %s318_s2 }
  0x2d   :  { %p325_p5 = por %p324_p4, %p323_p3 }
  0x2e   :  { %265 = vmatpush3.bf16.msra.mxu0 %v264_v7 }
  0x2f   :  { %p326_p6 = pnand %p325_p5, %p319_p2 }
  0x31   :  { %253 = vmatmul.mubr.msk.f32.vlgmr.msra.gmra.mrb[0].mxu0 %vm60_vm1, %v48_v8 }
 0x104   :  { %v130_v10 = vpop.f32.mrb[0].mxu0 }
 0x105   :  { %v131_v11 = vadd.f32 %v233_v9, %v130_v10  ;;  %v254_v12 = vpop.f32.mrb[1].mxu0 }
 0x107   :  { %v134_v13 = vmax.f32 %v131_v11, 0.0 }
 0x109   :  { %256 = vmatpush3.xpose.msk.msra.mxu1 %vm138_vm2, %v134_v13 }
 0x10c   :  { %258 = vmatmul.mubr.msk.f32.vlgmr.msra.gmra.mrb[0].mxu1 %vm138_vm2, %v135_v14 }
 0x1df   :  { %v211_v16 = vpop.f32.mrb[0].mxu1 }
 0x1e0   :  { %v212_v17 = vadd.f32 %v211_v16, %v137_v15  ;;  %v259_v18 = vpop.f32.mrb[1].mxu1 }
 0x1e2   :  { %216 = vst.msk [vmem:[#allocation8] sm:$0x1] %vm215_vm3, %v212_v17 }
 0x1e3   :  { %329 = shalt.err (!%p326_p6)
}
 0x1e4   :  { %s330_s4 = scalar_lea.hbm %s441_s5, 16 }
 0x1e5   :  { %p331_p7 = scmp.ne.s32.totalorder %s441_s5, %s330_s4  ;;  %p334_p8 = scmp.lt.u32.totalorder %s330_s4, %s441_s5 }
 0x1e7   :  { %p336_p9 = pnand %p334_p8, %p331_p7 }
 0x1e9   :  { %339 = shalt.err (!%p336_p9)
}
 0x1ea   :  { %226 = dma.vmem_to_hbm [thread:$0]  %s224_s24, 16, %s441_s5, [#allocation5]  }
 0x1eb   :  { %344 = dma.done.wait [#allocation5], 16  }
 0x1ec   :  { %345 = vsyncadd [#allocation5], 4294967280 }
 0x1ed   :  { %230 = vsyncpa [#allocation4], 1 }
 0x1ee   :  { %231 = vsyncpa [#allocation7], 1 }
 0x1ef   :  { %232 = vsyncpa [#allocation5], 1 }

</bundles_post_ra>
